<compile_context>
chip_gen: v7x
topology: tpu7x:2x2x1
jax: 0.10.0
libtpu: 0.0.40
codegen_flags: <defaults>
</compile_context>

<pallas_src>
import functools

import jax
import jax.numpy as jnp
from jax.experimental import pallas as pl
from jax.experimental.pallas import tpu as pltpu


def _smooth_loss_kernel(img_ref, depth_ref, img_halo_ref, depth_halo_ref,
                        out_ref, *, inv_c, inv_nx, inv_ny):
    t = pl.program_id(1)

    c, th, w = img_ref.shape          # [C, TH, W]  (channel-first tile)
    cd = depth_ref.shape[0]           # depth tile is [Cd, TH, W]

    shift_w = w - 1                   # rotate by -1 along lanes (W)
    shift_h = th - 1                  # rotate by -1 along sublanes (H)

    # Validity masks: exclude the single wrap-around column/row of the rotate.
    # Built from a rolled iota so they are correct regardless of the rotate
    # direction convention (requires W, H >= 3 — asserted in the wrapper).
    row = jax.lax.broadcasted_iota(jnp.int32, (th, w), 0)
    col = jax.lax.broadcasted_iota(jnp.int32, (th, w), 1)
    mask_x = (jnp.abs(pltpu.roll(col, shift_w, axis=1) - col) == 1).astype(jnp.float32)
    mask_y = (jnp.abs(pltpu.roll(row, shift_h, axis=0) - row) == 1).astype(jnp.float32)

    # ---- image gradients: channel mean as elementwise adds over C planes ----
    gix = jnp.zeros((th, w), jnp.float32)
    giy = jnp.zeros((th, w), jnp.float32)
    gib = jnp.zeros((1, w), jnp.float32)      # boundary row (last row vs halo)
    for ci in range(c):
        plane = img_ref[ci].astype(jnp.float32)                       # [TH, W]
        gix += jnp.abs(pltpu.roll(plane, shift_w, axis=1) - plane)
        giy += jnp.abs(pltpu.roll(plane, shift_h, axis=0) - plane)
        halo = img_halo_ref[ci].astype(jnp.float32)                   # [1, W]
        gib += jnp.abs(halo - plane[th - 1:th, :])
    ex = jnp.exp(-(gix * inv_c))              # [TH, W]  (EUP)
    ey = jnp.exp(-(giy * inv_c))
    eb = jnp.exp(-(gib * inv_c))              # [1, W]

    # ---- depth gradients (summed over depth channels; weight is per-pixel) --
    gdx = jnp.zeros((th, w), jnp.float32)
    gdy = jnp.zeros((th, w), jnp.float32)
    gdb = jnp.zeros((1, w), jnp.float32)
    for ci in range(cd):
        dplane = depth_ref[ci].astype(jnp.float32)
        gdx += jnp.abs(pltpu.roll(dplane, shift_w, axis=1) - dplane)
        gdy += jnp.abs(pltpu.roll(dplane, shift_h, axis=0) - dplane)
        dhalo = depth_halo_ref[ci].astype(jnp.float32)
        gdb += jnp.abs(dhalo - dplane[th - 1:th, :])

    # Weight, mask the wrap positions, and fold in the global 1/count factors.
    wx = gdx * ex * mask_x * inv_nx
    wy = gdy * ey * mask_y * inv_ny
    # The boundary y-pair only exists when there is a tile below this one.
    has_next = jnp.where(t + 1 < pl.num_programs(1), 1.0, 0.0)
    wb = gdb * eb * (inv_ny * has_next)

    # Per-tile partial: reduce over rows only, keep the lane axis; the tiny
    # final cross-lane / cross-tile reduction happens in the wrapper.
    out_ref[...] = jnp.sum(wx + wy, axis=0, keepdims=True) + wb


def _pick_tile_h(h, w, c_total, itemsize, budget_bytes=2 << 20):
    """Largest multiple-of-8 divisor of H whose (img+depth) tile stays within a
    small VMEM budget, so double-buffered tiles fit v5e/v7x scoped VMEM."""
    if h % 8 != 0:
        return h                                  # single full-height block
    max_rows = max(8, budget_bytes // max(1, w * c_total * itemsize))
    cands = [th for th in range(8, h + 1, 8) if h % th == 0 and th <= max_rows]
    return max(cands) if cands else 8


def smooth_loss(img, depth, *, tile_h=None):
    """img: [B, H, W, C], depth: [B, H, W, Cd] (NHWC, same as the torch module)."""
    b, h, w, c = img.shape
    bd, hd, wd, cd = depth.shape
    assert (b, h, w) == (bd, hd, wd)
    assert h >= 3 and w >= 3, "spatial dims must be >= 3"

    # Lane-dense layout: channel-first so W sits on the 128-wide lane axis.
    img_cf = jnp.transpose(img, (0, 3, 1, 2))        # [B, C,  H, W]
    depth_cf = jnp.transpose(depth, (0, 3, 1, 2))    # [B, Cd, H, W]

    if tile_h is None:
        tile_h = _pick_tile_h(h, w, c + cd, img_cf.dtype.itemsize)
    assert h % tile_h == 0 and (tile_h == h or tile_h % 8 == 0), tile_h
    n_th = h // tile_h

    # 1-row halo per tile: the row just below each tile (needed for the
    # y-gradient pair straddling a tile boundary). Last tile gets a dummy row
    # that the kernel disables via has_next.
    def next_rows(x_cf):                                       # [B, Cc, H, W]
        nxt = x_cf[:, :, tile_h::tile_h, :]                    # [B, Cc, n_th-1, W]
        pad = x_cf[:, :, :1, :]                                # dummy for last tile
        nxt = jnp.concatenate([nxt, pad], axis=2)              # [B, Cc, n_th, W]
        return jnp.transpose(nxt, (0, 2, 1, 3))[:, :, :, None, :]  # [B, n_th, Cc, 1, W]

    img_halo = next_rows(img_cf)
    depth_halo = next_rows(depth_cf)

    inv_c = 1.0 / float(c)
    inv_nx = 1.0 / float(b * h * (w - 1) * cd)   # element count of grad_disp_x
    inv_ny = 1.0 / float(b * (h - 1) * w * cd)   # element count of grad_disp_y

    kernel = functools.partial(_smooth_loss_kernel,
                               inv_c=inv_c, inv_nx=inv_nx, inv_ny=inv_ny)

    partials = pl.pallas_call(
        kernel,
        out_shape=jax.ShapeDtypeStruct((b, n_th, 1, w), jnp.float32),
        grid_spec=pltpu.PrefetchScalarGridSpec(
            num_scalar_prefetch=0,
            grid=(b, n_th),
            in_specs=[
                pl.BlockSpec((None, c, tile_h, w), lambda bi, ti: (bi, 0, ti, 0)),
                pl.BlockSpec((None, cd, tile_h, w), lambda bi, ti: (bi, 0, ti, 0)),
                pl.BlockSpec((None, None, c, 1, w), lambda bi, ti: (bi, ti, 0, 0, 0)),
                pl.BlockSpec((None, None, cd, 1, w), lambda bi, ti: (bi, ti, 0, 0, 0)),
            ],
            out_specs=pl.BlockSpec((None, None, 1, w), lambda bi, ti: (bi, ti, 0, 0)),
        ),
        compiler_params=pltpu.CompilerParams(
            # Each grid step writes its own output block -> safe to shard both
            # axes across TensorCores (v7x megacore).
            dimension_semantics=("parallel", "parallel"),
        ),
    )(img_cf, depth_cf, img_halo, depth_halo)

    # Tiny final reduction of the already-normalized per-tile lane partials.
    return jnp.sum(partials)


if __name__ == "__main__":
    key = jax.random.PRNGKey(0)
    k1, k2 = jax.random.split(key)

    B, H, W, C = 2, 16, 16, 4
    img = jax.random.uniform(k1, (B, H, W, C), dtype=jnp.float32)
    depth = jax.random.uniform(k2, (B, H, W, 1), dtype=jnp.float32)

    # Pure-JAX reference (identical semantics to the PyTorch forward).
    gdx = jnp.abs(depth[:, :, :-1, :] - depth[:, :, 1:, :])
    gdy = jnp.abs(depth[:, :-1, :, :] - depth[:, 1:, :, :])
    gix = jnp.mean(jnp.abs(img[:, :, :-1, :] - img[:, :, 1:, :]), -1, keepdims=True)
    giy = jnp.mean(jnp.abs(img[:, :-1, :, :] - img[:, 1:, :, :]), -1, keepdims=True)
    ref = (gdx * jnp.exp(-gix)).mean() + (gdy * jnp.exp(-giy)).mean()

    # Multi-tile path (H=16, tile_h=8): exercises the halo / boundary handling.
    loss_tiled = jax.block_until_ready(
        jax.jit(lambda a, d: smooth_loss(a, d, tile_h=8))(img, depth))
    # Default path (tile_h auto-picked; single tile for this small image).
    loss_full = jax.block_until_ready(jax.jit(smooth_loss)(img, depth))

    assert jnp.allclose(loss_tiled, ref, atol=1e-5, rtol=1e-5), (loss_tiled, ref)
    assert jnp.allclose(loss_full, ref, atol=1e-5, rtol=1e-5), (loss_full, ref)
    print("KERNEL_OK")
</pallas_src>

<mosaic_0001>
module attributes {stable_mosaic.version = 11 : i64} {
  func.func @_smooth_loss_kernel(%arg0: i32, %arg1: i32, %arg2: memref<1x4x8x16xf32, #tpu.memory_space<vmem>>, %arg3: memref<1x1x8x16xf32, #tpu.memory_space<vmem>>, %arg4: memref<1x1x4x1x16xf32, #tpu.memory_space<vmem>>, %arg5: memref<1x1x1x1x16xf32, #tpu.memory_space<vmem>>, %arg6: memref<1x1x1x16xf32, #tpu.memory_space<vmem>>) attributes {dimension_semantics = [#tpu.dimension_semantics<parallel>, #tpu.dimension_semantics<parallel>], iteration_bounds = array<i64: 2, 2>, scalar_prefetch = 0 : i64, scratch_operands = 0 : i64, tpu.core_type = #tpu.core_type<tc>, window_params = [{transform_indices = @transform_0, window_bounds = array<i64: 1, 4, 8, 16>}, {transform_indices = @transform_1, window_bounds = array<i64: 1, 1, 8, 16>}, {transform_indices = @transform_2, window_bounds = array<i64: 1, 1, 4, 1, 16>}, {transform_indices = @transform_3, window_bounds = array<i64: 1, 1, 1, 1, 16>}, {transform_indices = @transform_4, window_bounds = array<i64: 1, 1, 1, 16>}]} {
    %0 = tpu.iota {dimensions = array<i32: 0>} : vector<8x16xi32>
    %1 = tpu.iota {dimensions = array<i32: 1>} : vector<8x16xi32>
    %c15_i32 = arith.constant 15 : i32
    %2 = tpu.dynamic_rotate %1 by %c15_i32 dim 1 : vector<8x16xi32>, i32 -> vector<8x16xi32>
    %3 = arith.subi %2, %1 : vector<8x16xi32>
    %4 = math.absi %3 : vector<8x16xi32>
    %c1_i32 = arith.constant 1 : i32
    %5 = vector.broadcast %c1_i32 : i32 to vector<8x16xi32>
    %6 = arith.cmpi eq, %4, %5 : vector<8x16xi32>
    %7 = arith.extui %6 : vector<8x16xi1> to vector<8x16xi32>
    %8 = arith.sitofp %7 : vector<8x16xi32> to vector<8x16xf32>
    %c7_i32 = arith.constant 7 : i32
    %9 = tpu.dynamic_rotate %0 by %c7_i32 dim 0 : vector<8x16xi32>, i32 -> vector<8x16xi32>
    %10 = arith.subi %9, %0 : vector<8x16xi32>
    %11 = math.absi %10 : vector<8x16xi32>
    %c1_i32_0 = arith.constant 1 : i32
    %12 = vector.broadcast %c1_i32_0 : i32 to vector<8x16xi32>
    %13 = arith.cmpi eq, %11, %12 : vector<8x16xi32>
    %14 = arith.extui %13 : vector<8x16xi1> to vector<8x16xi32>
    %15 = arith.sitofp %14 : vector<8x16xi32> to vector<8x16xf32>
    %cst = arith.constant 0.000000e+00 : f32
    %16 = vector.broadcast %cst : f32 to vector<8x16xf32>
    %cst_1 = arith.constant 0.000000e+00 : f32
    %17 = vector.broadcast %cst_1 : f32 to vector<8x16xf32>
    %cst_2 = arith.constant 0.000000e+00 : f32
    %18 = vector.broadcast %cst_2 : f32 to vector<1x16xf32>
    %c0 = arith.constant 0 : index
    %c0_3 = arith.constant 0 : index
    %c0_4 = arith.constant 0 : index
    %c0_5 = arith.constant 0 : index
    %19 = vector.load %arg2[%c0, %c0_3, %c0_4, %c0_5] : memref<1x4x8x16xf32, #tpu.memory_space<vmem>>, vector<1x1x8x16xf32>
    %20 = vector.shape_cast %19 : vector<1x1x8x16xf32> to vector<8x16xf32>
    %c15_i32_6 = arith.constant 15 : i32
    %21 = tpu.dynamic_rotate %20 by %c15_i32_6 dim 1 : vector<8x16xf32>, i32 -> vector<8x16xf32>
    %22 = arith.subf %21, %20 : vector<8x16xf32>
    %23 = math.absf %22 : vector<8x16xf32>
    %24 = arith.addf %16, %23 : vector<8x16xf32>
    %c7_i32_7 = arith.constant 7 : i32
    %25 = tpu.dynamic_rotate %20 by %c7_i32_7 dim 0 : vector<8x16xf32>, i32 -> vector<8x16xf32>
    %26 = arith.subf %25, %20 : vector<8x16xf32>
    %27 = math.absf %26 : vector<8x16xf32>
    %28 = arith.addf %17, %27 : vector<8x16xf32>
    %c0_8 = arith.constant 0 : index
    %c0_9 = arith.constant 0 : index
    %c0_10 = arith.constant 0 : index
    %c0_11 = arith.constant 0 : index
    %c0_12 = arith.constant 0 : index
    %29 = vector.load %arg4[%c0_8, %c0_9, %c0_10, %c0_11, %c0_12] : memref<1x1x4x1x16xf32, #tpu.memory_space<vmem>>, vector<1x1x1x1x16xf32>
    %30 = vector.shape_cast %29 : vector<1x1x1x1x16xf32> to vector<1x16xf32>
    %31 = vector.extract_strided_slice %20 {offsets = [7, 0], sizes = [1, 16], strides = [1, 1]} : vector<8x16xf32> to vector<1x16xf32>
    %32 = arith.subf %30, %31 : vector<1x16xf32>
    %33 = math.absf %32 : vector<1x16xf32>
    %34 = arith.addf %18, %33 : vector<1x16xf32>
    %c0_13 = arith.constant 0 : index
    %c1 = arith.constant 1 : index
    %c0_14 = arith.constant 0 : index
    %c0_15 = arith.constant 0 : index
    %35 = vector.load %arg2[%c0_13, %c1, %c0_14, %c0_15] : memref<1x4x8x16xf32, #tpu.memory_space<vmem>>, vector<1x1x8x16xf32>
    %36 = vector.shape_cast %35 : vector<1x1x8x16xf32> to vector<8x16xf32>
    %c15_i32_16 = arith.constant 15 : i32
    %37 = tpu.dynamic_rotate %36 by %c15_i32_16 dim 1 : vector<8x16xf32>, i32 -> vector<8x16xf32>
    %38 = arith.subf %37, %36 : vector<8x16xf32>
    %39 = math.absf %38 : vector<8x16xf32>
    %40 = arith.addf %24, %39 : vector<8x16xf32>
    %c7_i32_17 = arith.constant 7 : i32
    %41 = tpu.dynamic_rotate %36 by %c7_i32_17 dim 0 : vector<8x16xf32>, i32 -> vector<8x16xf32>
    %42 = arith.subf %41, %36 : vector<8x16xf32>
    %43 = math.absf %42 : vector<8x16xf32>
    %44 = arith.addf %28, %43 : vector<8x16xf32>
    %c0_18 = arith.constant 0 : index
    %c0_19 = arith.constant 0 : index
    %c1_20 = arith.constant 1 : index
    %c0_21 = arith.constant 0 : index
    %c0_22 = arith.constant 0 : index
    %45 = vector.load %arg4[%c0_18, %c0_19, %c1_20, %c0_21, %c0_22] : memref<1x1x4x1x16xf32, #tpu.memory_space<vmem>>, vector<1x1x1x1x16xf32>
    %46 = vector.shape_cast %45 : vector<1x1x1x1x16xf32> to vector<1x16xf32>
    %47 = vector.extract_strided_slice %36 {offsets = [7, 0], sizes = [1, 16], strides = [1, 1]} : vector<8x16xf32> to vector<1x16xf32>
    %48 = arith.subf %46, %47 : vector<1x16xf32>
    %49 = math.absf %48 : vector<1x16xf32>
    %50 = arith.addf %34, %49 : vector<1x16xf32>
    %c0_23 = arith.constant 0 : index
    %c2 = arith.constant 2 : index
    %c0_24 = arith.constant 0 : index
    %c0_25 = arith.constant 0 : index
    %51 = vector.load %arg2[%c0_23, %c2, %c0_24, %c0_25] : memref<1x4x8x16xf32, #tpu.memory_space<vmem>>, vector<1x1x8x16xf32>
    %52 = vector.shape_cast %51 : vector<1x1x8x16xf32> to vector<8x16xf32>
    %c15_i32_26 = arith.constant 15 : i32
    %53 = tpu.dynamic_rotate %52 by %c15_i32_26 dim 1 : vector<8x16xf32>, i32 -> vector<8x16xf32>
    %54 = arith.subf %53, %52 : vector<8x16xf32>
    %55 = math.absf %54 : vector<8x16xf32>
    %56 = arith.addf %40, %55 : vector<8x16xf32>
    %c7_i32_27 = arith.constant 7 : i32
    %57 = tpu.dynamic_rotate %52 by %c7_i32_27 dim 0 : vector<8x16xf32>, i32 -> vector<8x16xf32>
    %58 = arith.subf %57, %52 : vector<8x16xf32>
    %59 = math.absf %58 : vector<8x16xf32>
    %60 = arith.addf %44, %59 : vector<8x16xf32>
    %c0_28 = arith.constant 0 : index
    %c0_29 = arith.constant 0 : index
    %c2_30 = arith.constant 2 : index
    %c0_31 = arith.constant 0 : index
    %c0_32 = arith.constant 0 : index
    %61 = vector.load %arg4[%c0_28, %c0_29, %c2_30, %c0_31, %c0_32] : memref<1x1x4x1x16xf32, #tpu.memory_space<vmem>>, vector<1x1x1x1x16xf32>
    %62 = vector.shape_cast %61 : vector<1x1x1x1x16xf32> to vector<1x16xf32>
    %63 = vector.extract_strided_slice %52 {offsets = [7, 0], sizes = [1, 16], strides = [1, 1]} : vector<8x16xf32> to vector<1x16xf32>
    %64 = arith.subf %62, %63 : vector<1x16xf32>
    %65 = math.absf %64 : vector<1x16xf32>
    %66 = arith.addf %50, %65 : vector<1x16xf32>
    %c0_33 = arith.constant 0 : index
    %c3 = arith.constant 3 : index
    %c0_34 = arith.constant 0 : index
    %c0_35 = arith.constant 0 : index
    %67 = vector.load %arg2[%c0_33, %c3, %c0_34, %c0_35] : memref<1x4x8x16xf32, #tpu.memory_space<vmem>>, vector<1x1x8x16xf32>
    %68 = vector.shape_cast %67 : vector<1x1x8x16xf32> to vector<8x16xf32>
    %c15_i32_36 = arith.constant 15 : i32
    %69 = tpu.dynamic_rotate %68 by %c15_i32_36 dim 1 : vector<8x16xf32>, i32 -> vector<8x16xf32>
    %70 = arith.subf %69, %68 : vector<8x16xf32>
    %71 = math.absf %70 : vector<8x16xf32>
    %72 = arith.addf %56, %71 : vector<8x16xf32>
    %c7_i32_37 = arith.constant 7 : i32
    %73 = tpu.dynamic_rotate %68 by %c7_i32_37 dim 0 : vector<8x16xf32>, i32 -> vector<8x16xf32>
    %74 = arith.subf %73, %68 : vector<8x16xf32>
    %75 = math.absf %74 : vector<8x16xf32>
    %76 = arith.addf %60, %75 : vector<8x16xf32>
    %c0_38 = arith.constant 0 : index
    %c0_39 = arith.constant 0 : index
    %c3_40 = arith.constant 3 : index
    %c0_41 = arith.constant 0 : index
    %c0_42 = arith.constant 0 : index
    %77 = vector.load %arg4[%c0_38, %c0_39, %c3_40, %c0_41, %c0_42] : memref<1x1x4x1x16xf32, #tpu.memory_space<vmem>>, vector<1x1x1x1x16xf32>
    %78 = vector.shape_cast %77 : vector<1x1x1x1x16xf32> to vector<1x16xf32>
    %79 = vector.extract_strided_slice %68 {offsets = [7, 0], sizes = [1, 16], strides = [1, 1]} : vector<8x16xf32> to vector<1x16xf32>
    %80 = arith.subf %78, %79 : vector<1x16xf32>
    %81 = math.absf %80 : vector<1x16xf32>
    %82 = arith.addf %66, %81 : vector<1x16xf32>
    %cst_43 = arith.constant 2.500000e-01 : f32
    %83 = vector.broadcast %cst_43 : f32 to vector<8x16xf32>
    %84 = arith.mulf %72, %83 : vector<8x16xf32>
    %cst_44 = arith.constant 0.000000e+00 : f32
    %85 = vector.broadcast %cst_44 : f32 to vector<8x16xf32>
    %86 = arith.subf %85, %84 : vector<8x16xf32>
    %87 = math.exp %86 : vector<8x16xf32>
    %cst_45 = arith.constant 2.500000e-01 : f32
    %88 = vector.broadcast %cst_45 : f32 to vector<8x16xf32>
    %89 = arith.mulf %76, %88 : vector<8x16xf32>
    %cst_46 = arith.constant 0.000000e+00 : f32
    %90 = vector.broadcast %cst_46 : f32 to vector<8x16xf32>
    %91 = arith.subf %90, %89 : vector<8x16xf32>
    %92 = math.exp %91 : vector<8x16xf32>
    %cst_47 = arith.constant 2.500000e-01 : f32
    %93 = vector.broadcast %cst_47 : f32 to vector<1x16xf32>
    %94 = arith.mulf %82, %93 : vector<1x16xf32>
    %cst_48 = arith.constant 0.000000e+00 : f32
    %95 = vector.broadcast %cst_48 : f32 to vector<1x16xf32>
    %96 = arith.subf %95, %94 : vector<1x16xf32>
    %97 = math.exp %96 : vector<1x16xf32>
    %cst_49 = arith.constant 0.000000e+00 : f32
    %98 = vector.broadcast %cst_49 : f32 to vector<8x16xf32>
    %cst_50 = arith.constant 0.000000e+00 : f32
    %99 = vector.broadcast %cst_50 : f32 to vector<8x16xf32>
    %cst_51 = arith.constant 0.000000e+00 : f32
    %100 = vector.broadcast %cst_51 : f32 to vector<1x16xf32>
    %c0_52 = arith.constant 0 : index
    %c0_53 = arith.constant 0 : index
    %c0_54 = arith.constant 0 : index
    %c0_55 = arith.constant 0 : index
    %101 = vector.load %arg3[%c0_52, %c0_53, %c0_54, %c0_55] : memref<1x1x8x16xf32, #tpu.memory_space<vmem>>, vector<1x1x8x16xf32>
    %102 = vector.shape_cast %101 : vector<1x1x8x16xf32> to vector<8x16xf32>
    %c15_i32_56 = arith.constant 15 : i32
    %103 = tpu.dynamic_rotate %102 by %c15_i32_56 dim 1 : vector<8x16xf32>, i32 -> vector<8x16xf32>
    %104 = arith.subf %103, %102 : vector<8x16xf32>
    %105 = math.absf %104 : vector<8x16xf32>
    %106 = arith.addf %98, %105 : vector<8x16xf32>
    %c7_i32_57 = arith.constant 7 : i32
    %107 = tpu.dynamic_rotate %102 by %c7_i32_57 dim 0 : vector<8x16xf32>, i32 -> vector<8x16xf32>
    %108 = arith.subf %107, %102 : vector<8x16xf32>
    %109 = math.absf %108 : vector<8x16xf32>
    %110 = arith.addf %99, %109 : vector<8x16xf32>
    %c0_58 = arith.constant 0 : index
    %c0_59 = arith.constant 0 : index
    %c0_60 = arith.constant 0 : index
    %c0_61 = arith.constant 0 : index
    %c0_62 = arith.constant 0 : index
    %111 = vector.load %arg5[%c0_58, %c0_59, %c0_60, %c0_61, %c0_62] : memref<1x1x1x1x16xf32, #tpu.memory_space<vmem>>, vector<1x1x1x1x16xf32>
    %112 = vector.shape_cast %111 : vector<1x1x1x1x16xf32> to vector<1x16xf32>
    %113 = vector.extract_strided_slice %102 {offsets = [7, 0], sizes = [1, 16], strides = [1, 1]} : vector<8x16xf32> to vector<1x16xf32>
    %114 = arith.subf %112, %113 : vector<1x16xf32>
    %115 = math.absf %114 : vector<1x16xf32>
    %116 = arith.addf %100, %115 : vector<1x16xf32>
    %117 = arith.mulf %106, %87 : vector<8x16xf32>
    %118 = arith.mulf %117, %8 : vector<8x16xf32>
    %cst_63 = arith.constant 0.00208333344 : f32
    %119 = vector.broadcast %cst_63 : f32 to vector<8x16xf32>
    %120 = arith.mulf %118, %119 : vector<8x16xf32>
    %121 = arith.mulf %110, %92 : vector<8x16xf32>
    %122 = arith.mulf %121, %15 : vector<8x16xf32>
    %cst_64 = arith.constant 0.00208333344 : f32
    %123 = vector.broadcast %cst_64 : f32 to vector<8x16xf32>
    %124 = arith.mulf %122, %123 : vector<8x16xf32>
    %c1_i32_65 = arith.constant 1 : i32
    %125 = arith.addi %arg1, %c1_i32_65 : i32
    %c2_i32 = arith.constant 2 : i32
    %126 = arith.cmpi slt, %125, %c2_i32 : i32
    %cst_66 = arith.constant 1.000000e+00 : f32
    %cst_67 = arith.constant 0.000000e+00 : f32
    %127 = arith.select %126, %cst_66, %cst_67 : f32
    %128 = arith.mulf %116, %97 : vector<1x16xf32>
    %cst_68 = arith.constant 0.00208333344 : f32
    %129 = arith.mulf %cst_68, %127 : f32
    %130 = vector.broadcast %129 : f32 to vector<1x16xf32>
    %131 = arith.mulf %128, %130 : vector<1x16xf32>
    %132 = arith.addf %120, %124 : vector<8x16xf32>
    %cst_69 = arith.constant dense<0.000000e+00> : vector<16xf32>
    %133 = vector.multi_reduction <add>, %132, %cst_69 [0] : vector<8x16xf32> to vector<16xf32>
    %134 = vector.shape_cast %133 : vector<16xf32> to vector<1x16xf32>
    %135 = arith.addf %134, %131 : vector<1x16xf32>
    %c0_70 = arith.constant 0 : index
    %c0_71 = arith.constant 0 : index
    %c0_72 = arith.constant 0 : index
    %c0_73 = arith.constant 0 : index
    %136 = vector.load %arg6[%c0_70, %c0_71, %c0_72, %c0_73] : memref<1x1x1x16xf32, #tpu.memory_space<vmem>>, vector<1x1x1x16xf32>
    %137 = vector.shape_cast %136 : vector<1x1x1x16xf32> to vector<1x16xf32>
    %138 = vector.shape_cast %135 : vector<1x16xf32> to vector<1x1x1x16xf32>
    tpu.vector_store %arg6[%c0_70, %c0_71, %c0_72, %c0_73], %138 {strides = array<i32>} : memref<1x1x1x16xf32, #tpu.memory_space<vmem>>, vector<1x1x1x16xf32>,
    return
  }
  func.func @transform_0(%arg0: i32, %arg1: i32) -> (i32, i32, i32, i32) {
    %c0_i32 = arith.constant 0 : i32
    %c0_i32_0 = arith.constant 0 : i32
    %c0_i32_1 = arith.constant 0 : i32
    return %arg0, %c0_i32, %arg1, %c0_i32_0 : i32, i32, i32, i32
  }
  func.func @transform_1(%arg0: i32, %arg1: i32) -> (i32, i32, i32, i32) {
    %c0_i32 = arith.constant 0 : i32
    %c0_i32_0 = arith.constant 0 : i32
    %c0_i32_1 = arith.constant 0 : i32
    return %arg0, %c0_i32, %arg1, %c0_i32_0 : i32, i32, i32, i32
  }
  func.func @transform_2(%arg0: i32, %arg1: i32) -> (i32, i32, i32, i32, i32) {
    %c0_i32 = arith.constant 0 : i32
    %c0_i32_0 = arith.constant 0 : i32
    %c0_i32_1 = arith.constant 0 : i32
    %c0_i32_2 = arith.constant 0 : i32
    return %arg0, %arg1, %c0_i32, %c0_i32_0, %c0_i32_1 : i32, i32, i32, i32, i32
  }
  func.func @transform_3(%arg0: i32, %arg1: i32) -> (i32, i32, i32, i32, i32) {
    %c0_i32 = arith.constant 0 : i32
    %c0_i32_0 = arith.constant 0 : i32
    %c0_i32_1 = arith.constant 0 : i32
    %c0_i32_2 = arith.constant 0 : i32
    return %arg0, %arg1, %c0_i32, %c0_i32_0, %c0_i32_1 : i32, i32, i32, i32, i32
  }
  func.func @transform_4(%arg0: i32, %arg1: i32) -> (i32, i32, i32, i32) {
    %c0_i32 = arith.constant 0 : i32
    %c0_i32_0 = arith.constant 0 : i32
    %c0_i32_1 = arith.constant 0 : i32
    return %arg0, %arg1, %c0_i32, %c0_i32_0 : i32, i32, i32, i32
  }
}

</mosaic_0001>

<bundles_post_ra>
// kernel: _lambda_.1
= control target key start
LH: loop header
LB: loop body
LE: loop exit
PB: predicated region body
PF: predicated region fallthrough
CT: control target
= control target key end

     0   :  { %s961_s15 = smov 0   ;;  %s963_s16 = smov 0   ;;  %s1161_s0 = inlined_call_operand.vmem [shape: f32[2,4,16,16], index: 0, kind: input, shape index: {}]   ;;  %s1162_s1 = inlined_call_operand.vmem [shape: f32[2,1,16,16], index: 1, kind: input, shape index: {}]   ;;  %s1163_s2 = inlined_call_operand.vmem [shape: f32[2,2,4,1,16], index: 2, kind: input, shape index: {}]   ;;  %s1164_s3 = inlined_call_operand.vmem [shape: f32[2,2,1,1,16], index: 3, kind: input, shape index: {}]   ;;  %s1165_s4 = inlined_call_operand.vmem [shape: f32[2,2,1,16], index: 4, kind: output, shape index: {}]  }
   0x1   :  { %s965_s17 = smov 0   ;;  %s967_s18 = smov 0  }
   0x2   :  { %s969_s19 = smov 0   ;;  %s971_s20 = smov 0  }
   0x3   :  { %s973_s21 = smov 0  }
   0x4 LB: > { %s23_s22 = sadd.s32 1, %s921_s19  ;;  %s26_s23 = sadd.s32 1, %s925_s20  ;;  %s929_s21 = sphi %s973_s21, %s14_s21   ;;  %s925_s20 = sphi %s971_s20, %s1171_s20   ;;  %s921_s19 = sphi %s969_s19, %s1170_s19   ;;  %s917_s18 = sphi %s967_s18, %s1169_s18   ;;  %s913_s17 = sphi %s965_s17, %s1168_s17   ;;  %s909_s16 = sphi %s963_s16, %s1167_s16   ;;  %s905_s15 = sphi %s961_s15, %s1166_s15  }
   0x5   : > { %p24_p0 = scmp.ge.s32.totalorder %s23_s22, 2  ;;  %p42_p1 = scmp.ne.s32.totalorder %s909_s16, %s905_s15 }
   0x6   : > { %p43_p2 = scmp.eq.s32.totalorder %s929_s21, 0  ;;  %s35_s27 = sadd.s32 1, %s909_s16 }
   0x7   : > { %s1173_s22 = smov (%p24_p0, %s23_s22), 0  ;;  %s1175_s23 = smov (!%p24_p0, %s26_s23), %s925_s20 }
   0x8   : > { %p44_p3 = por %p43_p2, %p42_p1  ;;  %p28_p4 = scmp.ge.s32.totalorder %s1175_s23, 2 }
   0x9   : > { %s31_s24 = ssub.s32 %s921_s19, %s1173_s22  ;;  %p779_p6 = scmp.ge.s32.totalorder %s929_s21, 4 }
   0xa   : > { %s1177_s23 = smov (%p28_p4, %s1175_s23), 0 }
   0xb   : > { %s30_s25 = ssub.s32 %s925_s20, %s1177_s23  ;;  %180 = sbr.rel (%p779_p6) target bundleno = 26 (0x1a), region = 16 }
   0xc   : > { %s32_s26 = sor.u32 %s31_s24, %s30_s25 }
   0xd   : > { %p33_p5 = scmp.eq.s32.totalorder %s32_s26, 0 }
   0xf   : > { %s1012_s28 = scalar_select %p33_p5, %s909_s16, %s35_s27  }
  0x12   : > { %183 = sbr.rel (!%p44_p3) target bundleno = 26 (0x1a), region = 20  ;;  %s185_s29 = sand.u32 (%p44_p3), 1, %s909_s16  }
  0x13   : > { %s781_s30 = sshll.u32 (%p44_p3), %s925_s20, 3  ;;  %s780_s5 = sshll.u32 (%p44_p3), %s185_s29, 5 }
  0x14   : > { %s189_s6 = sadd.s32 (%p44_p3), %s921_s19, %s781_s30  ;;  %s187_s11 = scalar_lea.vmem (%p44_p3), [#allocation2], %s780_s5 }
  0x15   : > { %s782_s7 = sshll.u32 (%p44_p3), %s189_s6, 3 }
  0x16   : > { %s191_s10 = scalar_lea.vmem (%p44_p3), %s1161_s0, %s782_s7 }
  0x17   : > { %v225_v0 = vld [vmem:[%s191_s10] sm:$0xff] (%p44_p3)  ;;  %v227_v1 = vld [vmem:[%s191_s10 + $0x10] sm:$0xff] (%p44_p3) }
  0x18   : > { %v229_v2 = vld [vmem:[%s191_s10 + $0x20] sm:$0xff] (%p44_p3)  ;;  %226 = vst [vmem:[%s187_s11] sm:$0xff] (%p44_p3), %v225_v0  ;;  %228 = vst [vmem:[%s187_s11 + $0x8] sm:$0xff] (%p44_p3), %v227_v1  ;;  %v231_v3 = vld [vmem:[%s191_s10 + $0x30] sm:$0xff] (%p44_p3) }
  0x19   : > { %230 = vst [vmem:[%s187_s11 + $0x10] sm:$0xff] %v229_v2  ;;  %232 = vst [vmem:[%s187_s11 + $0x18] sm:$0xff] %v231_v3 }
  0x1a PF: > { %p783_p7 = scmp.ge.s32.totalorder %s929_s21, 1  ;;  %p269_p8 = scmp.lt.s32.totalorder %s929_s21, 5 }
  0x1c   : > { %p270_p9 = pnand %p783_p7, %p269_p8 }
  0x1d   : > { %s276_s12 = sand.u32 (!%p270_p9), 1, %s905_s15   ;;  %v356_v4 = vlaneseq (!%p270_p9)  ;;  %v931_v5 = vmov (!%p270_p9), 1966171168   ;;  %p326_p10 = scmp.lt.s32.totalorder (!%p270_p9), %s917_s18, 1  ;;  %vm360_vm0 = vcmask (!%p270_p9), 1047680   ;;  %vm620_vm3 = vcmask (!%p270_p9), 138248  }
  0x1e   : > { %273 = sbr.rel (%p270_p9) target bundleno = 438 (0x1b6), region = 70  ;;  %s784_s13 = sshll.u32 (!%p270_p9), %s276_s12, 5  ;;  %v405_v6 = vunpack.c.l.s4 (!%p270_p9), %v931_v5  ;;  %vm641_vm4 = vcmask (!%p270_p9), 122880  }
  0x1f   : > { %v1025_v7 = vshrl.u32 (!%p270_p9), %v356_v4, 7  ;;  %p328_p11 = scmp.lt.s32.totalorder (!%p270_p9), %s913_s17, 1  ;;  %s278_s14 = scalar_lea.vmem (!%p270_p9), [#allocation2], %s784_s13  ;;  %v1056_v20 = vand.u32 (!%p270_p9), 127, %v356_v4 }
  0x20   : > { %v1028_v8 = vld [vmem:[%s278_s14] sm:$0xff] (!%p270_p9)  ;;  %v1030_v9 = vld [vmem:[%s278_s14 + $0x8] sm:$0xff] (!%p270_p9)  ;;  %v1032_v10 = vld [vmem:[%s278_s14 + $0x10] sm:$0xff] (!%p270_p9)  ;;  %v406_v11 = vunpack.c.0.s8 (!%p270_p9), %v405_v6  ;;  %s932_s24 = smov (!%p270_p9), 16   ;;  %s933_s11 = smov (!%p270_p9), 1  }
  0x21   : > { %385 = vrot.lane.b32.xlu0 (!%p270_p9), %v1028_v8, %s932_s24  ;;  %v403_v12 = vcombine.high (!%p270_p9), %v1028_v8, %v1028_v8  ;;  %v445_v13 = vcombine.high (!%p270_p9), %v1030_v9, %v1030_v9  ;;  %468 = vrot.lane.b32.xlu1 (!%p270_p9), %v1032_v10, %s932_s24  ;;  %v487_v14 = vcombine.high (!%p270_p9), %v1032_v10, %v1032_v10  ;;  %v1046_v15 = vld [vmem:[%s278_s14 + $0x18] sm:$0xff] (!%p270_p9)  ;;  %s608_s12 = sadd.s32 (!%p270_p9), 1, %s913_s17  ;;  %v631_v1 = vsub.s32 (!%p270_p9), 0, %v1025_v7 }
  0x22   : > { %v409_v16 = vsub.s32 (!%p270_p9), %v406_v11, %v1025_v7  ;;  %v529_v21 = vcombine.high (!%p270_p9), %v1046_v15, %v1046_v15  ;;  %p609_p12 = scmp.lt.s32.totalorder (!%p270_p9), %s608_s12, 2  ;;  %v398_v4 = vrot.slane (!%p270_p9), %v1028_v8, 1  ;;  %v439_v5 = vrot.slane (!%p270_p9), %v1030_v9, 1 }
  0x24   : > { %v410_v17 = vrot.slane (!%p270_p9), %v403_v12, %v409_v16  ;;  %v452_v18 = vrot.slane (!%p270_p9), %v445_v13, %v409_v16  ;;  %v494_v19 = vrot.slane (!%p270_p9), %v487_v14, %v409_v16  ;;  %v536_v35 = vrot.slane (!%p270_p9), %v529_v21, %v409_v16 }
  0x25   : > { %s1179_s18 = smov (!%p326_p10, %s917_s18), 1  ;;  %426 = vrot.lane.b32.xlu0 %v1030_v9, %s932_s24  ;;  %510 = vrot.lane.b32.xlu1 %v1046_v15, %s932_s24  ;;  %v399_v6 = vsub.f32 %v398_v4, %v1028_v8  ;;  %v440_v11 = vsub.f32 %v439_v5, %v1030_v9  ;;  %v481_v12 = vrot.slane %v1032_v10, 1 }
  0x26   : > { %s329_s15 = scalar_select %p328_p11, %s913_s17, 1  ;;  %v411_v22 = vcombine.high %v410_v17, %v410_v17  ;;  %v453_v23 = vcombine.high %v452_v18, %v452_v18  ;;  %v495_v24 = vcombine.high %v494_v19, %v494_v19  ;;  %v537_v39 = vcombine.high %v536_v35, %v536_v35 }
  0x27   : > { %s785_s25 = sshll.u32 %s1179_s18, 1  ;;  %s788_s26 = sshll.u32 %s1179_s18, 3  ;;  %v400_v13 = vand.u32 2147483647, %v399_v6  ;;  %v441_v14 = vand.u32 2147483647, %v440_v11 }
  0x28   : > { %s1049_s27 = sadd.s32 %s785_s25, %s329_s15  ;;  %s787_s29 = sshll.u32 %s329_s15, 2  ;;  %v418_v27 = vrot.slane %v411_v22, %v409_v16  ;;  %v460_v28 = vrot.slane %v453_v23, %v409_v16  ;;  %v502_v29 = vrot.slane %v495_v24, %v409_v16  ;;  %v544_v44 = vrot.slane %v537_v39, %v409_v16 }
  0x29   : > { %s786_s30 = sshll.u32 %s1049_s27, 3  ;;  %s340_s5 = sadd.s32 %s788_s26, %s787_s29  ;;  %361 = vrot.lane.b32.xlu0 %v1056_v20, %s932_s24  ;;  %v523_v17 = vrot.slane %v1046_v15, 1  ;;  %v442_v18 = vadd.f32 %v441_v14, %v400_v13 }
  0x2a   : > { %s333_s18 = scalar_lea.vmem %s1162_s1, %s786_s30  ;;  %s341_s10 = scalar_lea.vmem %s1163_s2, %s340_s5  ;;  %v419_v32 = vcombine.high %v418_v27, %v418_v27  ;;  %v461_v33 = vcombine.high %v460_v28, %v460_v28  ;;  %v503_v34 = vcombine.high %v502_v29, %v502_v29  ;;  %v545_v47 = vcombine.high %v544_v44, %v544_v44 }
  0x2b   : > { %v1066_v25 = vld [vmem:[%s333_s18] sm:$0xff]  ;;  %s348_s15 = scalar_lea.vmem %s1164_s3, %s1049_s27  ;;  %v524_v21 = vsub.f32 %v523_v17, %v1046_v15  ;;  %v376_v28 = vrot.slane %v1025_v7, 1  ;;  %s935_s17 = smov 127  }
  0x2c   : > { %v402_v26 = vld [vmem:[%s341_s10] sm:$0x1]  ;;  %v796_v30 = vld [vmem:[%s341_s10 + $0x1] sm:$0x1]  ;;  %v798_v31 = vld [vmem:[%s341_s10 + $0x2] sm:$0x1]  ;;  %563 = vrot.lane.b32.xlu1 %v1066_v25, %s932_s24  ;;  %v581_v40 = vcombine.high %v1066_v25, %v1066_v25  ;;  %s355_s30 = scalar_lea.vmem %s1165_s4, %s1049_s27 }
  0x2d   : > { %v421_v36 = vsub.f32 %v402_v26, %v419_v32  ;;  %v463_v37 = vsub.f32 %v796_v30, %v461_v33  ;;  %v505_v38 = vsub.f32 %v798_v31, %v503_v34  ;;  %392 = vrot.lane.b32.xlu0 %v1028_v8, %s933_s11  ;;  %v800_v45 = vld [vmem:[%s341_s10 + $0x3] sm:$0x1]  ;;  %v580_v59 = vld [vmem:[%s348_s15] sm:$0x1]  ;;  %s610_s25 = scalar_select %p609_p12, 1.0, 0.0  ;;  %v377_v30 = vsub.s32 %v376_v28, %v1025_v7 }
  0x2e   : > { %v588_v48 = vrot.slane %v581_v40, %v409_v16  ;;  %v547_v50 = vsub.f32 %v800_v45, %v545_v47  ;;  %v525_v23 = vand.u32 2147483647, %v524_v21  ;;  %v576_v31 = vrot.slane %v1066_v25, 1 }
  0x2f   : > { %v422_v41 = vand.u32 2147483647, %v421_v36  ;;  %v464_v42 = vand.u32 2147483647, %v463_v37  ;;  %v506_v43 = vand.u32 2147483647, %v505_v38 }
  0x30   : > { %433 = vrot.lane.b32.xlu1 %v1030_v9, %s933_s11  ;;  %v548_v51 = vand.u32 2147483647, %v547_v50  ;;  %v589_v52 = vcombine.high %v588_v48, %v588_v48  ;;  %s612_s26 = smul.f32 0.0020833334, %s610_s25  ;;  %v379_v34 = vsub.s32 0, %v377_v30  ;;  %v577_v36 = vsub.f32 %v576_v31, %v1066_v25 }
  0x31   : > { %v465_v46 = vadd.f32 %v464_v42, %v422_v41  ;;  %v934_v47 = vmov 0.0  }
  0x32   : > { %v596_v55 = vrot.slane %v589_v52, %v409_v16  ;;  %v613_v63 = vstv %s612_s26  ;;  %v482_v16 = vsub.f32 %v481_v12, %v1032_v10  ;;  %v793_v7 = vmin.u32 %v379_v34, %v377_v30 }
  0x33   : > { %v507_v49 = vadd.f32 %v506_v43, %v465_v46  ;;  %v578_v41 = vand.u32 2147483647, %v577_v36 }
  0x34   : > { %v597_v58 = vcombine.high %v596_v55, %v596_v55  ;;  %v483_v19 = vand.u32 2147483647, %v482_v16  ;;  %vm381_vm1 = vcmp.eq.s32.totalorder %v793_v7, 1 }
  0x35   : > { %v549_v53 = vadd.f32 %v548_v51, %v507_v49  ;;  %v794_v48 = vsel %vm381_vm1, 1.0, %v934_v47 }
  0x36   : > { %v599_v60 = vsub.f32 %v580_v59, %v597_v58  ;;  %v484_v22 = vadd.f32 %v483_v19, %v442_v18 }
  0x37   : > { %v558_v54 = vmul.f32 0.25, %v549_v53 }
  0x38   : > { %v600_v61 = vand.u32 2147483647, %v599_v60  ;;  %v526_v24 = vadd.f32 %v525_v23, %v484_v22 }
  0x39   : > { %v559_v56 = vsub.f32 0.0, %v558_v54 }
  0x3a   : > { %v554_v26 = vmul.f32 0.25, %v526_v24 }
  0x3b   : > { %v560_v57 = vmul.f32 1.442695, %v559_v56 }
  0x3c   : > { %v555_v27 = vsub.f32 0.0, %v554_v26 }
  0x3d   : > { %869 = vpow2.f32 %v560_v57 }
  0x3e   : > { %v556_v29 = vmul.f32 1.442695, %v555_v27 }
  0x40   : > { %871 = vpow2.f32 %v556_v29 }
  0x47   : > { %v870_v62 = vpop.eup %869 }
  0x48   : > { %v611_v0 = vmul.f32 %v870_v62, %v600_v61 }
  0x4a   : > { %v614_v2 = vmul.f32 %v613_v63, %v611_v0  ;;  %v872_v42 = vpop.eup %871 }
  0x4b   : > { %v605_v45 = vmul.f32 %v872_v42, %v578_v41 }
  0x4c   : > { %v632_v3 = vrot.slane %v614_v2, %v631_v1 }
  0x4d   : > { %v606_v50 = vmul.f32 %v794_v48, %v605_v45 }
  0x4f   : > { %v607_v52 = vmul.f32 0.0020833334, %v606_v50 }
  0x93   : > { %v386_v32 = vpop.permute.xlu0 %385  ;;  %v469_v33 = vpop.permute.xlu1 %468 }
  0x94   : > { %v387_v35 = vsel %vm360_vm0, %v386_v32, %v1028_v8  ;;  %v470_v37 = vsel %vm360_vm0, %v469_v33, %v1032_v10 }
  0x95   : > { %388 = vrot.lane.b32.xlu0 %v387_v35, %s932_s24 }
  0x97   : > { %v427_v38 = vpop.permute.xlu0 %426  ;;  %v511_v39 = vpop.permute.xlu1 %510 }
  0x98   : > { %v428_v40 = vsel %vm360_vm0, %v427_v38, %v1030_v9  ;;  %v512_v43 = vsel %vm360_vm0, %v511_v39, %v1046_v15 }
  0x99   : > { %429 = vrot.lane.b32.xlu1 %v428_v40, %s932_s24  ;;  %471 = vrot.lane.b32.xlu0 %v470_v37, %s932_s24 }
  0x9b   : > { %v362_v44 = vpop.permute.xlu0 %361 }
  0x9c   : > { %v363_v46 = vsel %vm360_vm0, %v362_v44, %v1056_v20 }
  0x9d   : > { %475 = vrot.lane.b32.xlu1 %v1032_v10, %s933_s11  ;;  %513 = vrot.lane.b32.xlu0 %v512_v43, %s932_s24 }
  0x9e   : > { %v564_v49 = vpop.permute.xlu1 %563 }
  0x9f   : > { %v565_v51 = vsel %vm360_vm0, %v564_v49, %v1066_v25  ;;  %v393_v53 = vpop.permute.xlu0 %392 }
  0xa1   : > { %517 = vrot.lane.b32.xlu1 %v1046_v15, %s933_s11  ;;  %364 = vrot.lane.b32.xlu0 %v363_v46, %s932_s24 }
  0xa2   : > { %v434_v54 = vpop.permute.xlu1 %433 }
  0xa5   : > { %367 = vrot.lane.b32.xlu1 %v1056_v20, %s933_s11  ;;  %566 = vrot.lane.b32.xlu0 %v565_v51, %s932_s24 }
  0xa9   : > { %570 = vrot.lane.b32.xlu1 %v1066_v25, %s933_s11  ;;  %616 = vrot.lane.b32.xlu0 %v607_v52, %s933_s11 }
  0xad   : > { %633 = vrot.lane.b32.xlu1 %v632_v3, %s933_s11 }
 0x107   : > { %v389_v55 = vpop.permute.xlu0 %388 }
 0x108   : > { %v390_v56 = vsel %vm360_vm0, %v389_v55, %v1028_v8 }
 0x109   : > { %v395_v59 = vsub.f32 %v390_v56, %v393_v53 }
 0x10b   : > { %v430_v57 = vpop.permute.xlu1 %429  ;;  %v472_v58 = vpop.permute.xlu0 %471  ;;  %v396_v2 = vand.u32 2147483647, %v395_v59 }
 0x10c   : > { %v431_v60 = vsel %vm360_vm0, %v430_v57, %v1030_v9  ;;  %v473_v62 = vsel %vm360_vm0, %v472_v58, %v1032_v10 }
 0x10d   : > { %v436_v61 = vsub.f32 %v431_v60, %v434_v54 }
 0x10f   : > { %v437_v63 = vand.u32 2147483647, %v436_v61  ;;  %v476_v0 = vpop.permute.xlu1 %475  ;;  %v514_v1 = vpop.permute.xlu0 %513 }
 0x110   : > { %v478_v3 = vsub.f32 %v473_v62, %v476_v0  ;;  %v515_v4 = vsel %vm360_vm0, %v514_v1, %v1046_v15 }
 0x111   : > { %v438_v5 = vadd.f32 %v437_v63, %v396_v2 }
 0x112   : > { %v479_v8 = vand.u32 2147483647, %v478_v3 }
 0x113   : > { %v518_v6 = vpop.permute.xlu1 %517  ;;  %v365_v14 = vpop.permute.xlu0 %364 }
 0x114   : > { %v520_v11 = vsub.f32 %v515_v4, %v518_v6  ;;  %v480_v12 = vadd.f32 %v479_v8, %v438_v5  ;;  %v366_v10 = vsel %vm360_vm0, %v365_v14, %v1056_v20 }
 0x116   : > { %v521_v13 = vand.u32 2147483647, %v520_v11 }
 0x117   : > { %v368_v17 = vpop.permute.xlu1 %367  ;;  %v567_v21 = vpop.permute.xlu0 %566 }
 0x118   : > { %v522_v9 = vadd.f32 %v521_v13, %v480_v12  ;;  %v369_v19 = vsub.s32 %v366_v10, %v368_v17  ;;  %v568_v15 = vsel %vm360_vm0, %v567_v21, %v1066_v25 }
 0x11a   : > { %v550_v16 = vmul.f32 0.25, %v522_v9  ;;  %v371_v24 = vsub.s32 0, %v369_v19 }
 0x11b   : > { %v571_v23 = vpop.permute.xlu1 %570  ;;  %v617_v20 = vpop.permute.xlu0 %616 }
 0x11c   : > { %v551_v18 = vsub.f32 0.0, %v550_v16  ;;  %v573_v26 = vsub.f32 %v568_v15, %v571_v23  ;;  %v791_v27 = vmin.u32 %v371_v24, %v369_v19 }
 0x11e   : > { %v552_v22 = vmul.f32 1.442695, %v551_v18  ;;  %v574_v28 = vand.u32 2147483647, %v573_v26  ;;  %vm373_vm2 = vcmp.eq.s32.totalorder %v791_v27, 1 }
 0x11f   : > { %v792_v31 = vsel %vm373_vm2, 1.0, %v934_v47  ;;  %v634_v7 = vpop.permute.xlu1 %633 }
 0x120   : > { %873 = vpow2.f32 %v552_v22 }
 0x12a   : > { %v874_v29 = vpop.eup %873 }
 0x12b   : > { %v602_v30 = vmul.f32 %v874_v29, %v574_v28 }
 0x12d   : > { %v603_v32 = vmul.f32 %v792_v31, %v602_v30 }
 0x12f   : > { %v604_v33 = vmul.f32 0.0020833334, %v603_v32 }
 0x131   : > { %v619_v34 = vadd.f32 %v617_v20, %v604_v33 }
 0x133   : > { %v621_v35 = vsel %vm620_vm3, %v619_v34, 0.0 }
 0x134   : > { %v622_v36 = vrot.slane %v621_v35, 4 }
 0x136   : > { %v623_v37 = vadd.f32 %v622_v36, %v621_v35 }
 0x138   : > { %v624_v38 = vrot.slane %v623_v37, 2 }
 0x13a   : > { %v625_v39 = vadd.f32 %v624_v38, %v623_v37 }
 0x13c   : > { %v626_v25 = vrot.slane %v625_v39, 1 }
 0x13e   : > { %v627_v40 = vadd.f32 %v626_v25, %v625_v39 }
 0x140   : > { %v636_v41 = vadd.f32 %v634_v7, %v627_v40 }
 0x142   : > { %638 = vrot.lane.b32.xlu0 %v636_v41, %s935_s17 }
 0x1b4   : > { %v639_v42 = vpop.permute.xlu0 %638 }
 0x1b5   : > { %642 = vst.msk [vmem:[%s355_s30] sm:$0x1] %vm641_vm4, %v639_v42 }
 0x1b6 PF: > { %s14_s21 = sadd.s32 1, %s929_s21   ;;  %s1166_s15 = smov %s909_s16 }
 0x1b7   : > { %p11_p13 = scmp.ge.s32.totalorder %s14_s21, 6   ;;  %s1167_s16 = smov %s1012_s28 }
 0x1b8   : > { %s1168_s17 = smov %s921_s19  ;;  %s1169_s18 = smov %s925_s20 }
 0x1b9   : > { %s1170_s19 = smov %s1173_s22  ;;  %s1171_s20 = smov %s1177_s23 }
 0x1ba   :  { %13 = sbr.rel (!%p11_p13) target bundleno = 4 (0x4), region = 124 }

</bundles_post_ra>
